<compile_context>
chip_gen: v5e
topology: v5e:2x2
jax: 0.10.0
libtpu: 0.0.40
codegen_flags: <defaults>
</compile_context>

<pallas_src>
import functools

import jax
import jax.numpy as jnp
from jax.experimental import pallas as pl
from jax.experimental.pallas import tpu as pltpu

LANE = 128            # lane width / channel padding target
TILE_M_TARGET = 512   # output-row tile target (sweep 512-1024)
TILE_K_TARGET = 512   # reduction (neighbor-row) tile target (keep >= 256)


# ----------------------------- Pallas kernel --------------------------------
def _sage_layer_kernel(a_ref, xk_ref, xm_ref, dinv_ref, wl_ref, wr_ref, b_ref,
                       o_ref, acc_ref, *, apply_relu):
    """Fused SAGEConv layer, tiled over (row tile m, reduction tile k).

    a_ref    : (TM, TK)       bf16  block of UNNORMALIZED adjacency counts
    xk_ref   : (TK, Cin_p)    bf16  neighbor-feature rows for this k block
    xm_ref   : (TM, Cin_p)    bf16  root-feature rows for this m block
    dinv_ref : (TM, 1)        f32   exact 1/deg for this m block
    wl_ref   : (Cin_p, Cout_p) bf16 neighbor weight W_l
    wr_ref   : (Cin_p, Cout_p) bf16 root weight W_r
    b_ref    : (1, Cout_p)    f32   bias (lin_l)
    o_ref    : (TM, Cout_p)         output block
    acc_ref  : (TM, Cin_p)    f32   VMEM accumulator for sum_{j in N(i)} x_j
    """
    k = pl.program_id(1)

    @pl.when(k == 0)
    def _():
        acc_ref[...] = jnp.zeros_like(acc_ref)

    # accumulate (un-normalized) neighbor-feature sums on the MXU
    acc_ref[...] += jnp.dot(a_ref[...], xk_ref[...],
                            preferred_element_type=jnp.float32)

    @pl.when(k == pl.num_programs(1) - 1)
    def _():
        # exact f32 mean: scale the count-weighted sum by 1/deg in the epilogue
        agg = (acc_ref[...] * dinv_ref[...]).astype(wl_ref.dtype)
        out = jnp.dot(agg, wl_ref[...], preferred_element_type=jnp.float32)
        out = out + jnp.dot(xm_ref[...], wr_ref[...],
                            preferred_element_type=jnp.float32)
        out = out + b_ref[...]            # bias only in the epilogue
        if apply_relu:
            out = jnp.maximum(out, 0.0)
        o_ref[...] = out.astype(o_ref.dtype)


# ----------------------------- tiling helpers --------------------------------
def _round_up(x, m):
    return (x + m - 1) // m * m


def _pad2(a, rows, cols):
    return jnp.pad(a, ((0, rows - a.shape[0]), (0, cols - a.shape[1])))


def _padded_num_nodes(n):
    return _round_up(n, LANE)


def _choose_tiles(n_pad):
    """Pick (tile_m, tile_k) that divide n_pad (a multiple of 128).

    tile_m: as large as possible for HBM roofline, but keep >= 2 row tiles
    whenever the graph allows so the 'parallel' m axis can shard across the
    two v7x TensorCores.  tile_k: as large as possible (>=256 fills the
    v6e/v7x MXU contraction depth).
    """
    tm = TILE_M_TARGET
    while tm > LANE and (n_pad % tm != 0 or n_pad // tm < 2):
        tm //= 2
    tk = TILE_K_TARGET
    while tk > LANE and n_pad % tk != 0:
        tk //= 2
    return tm, tk


def _vmem_limit_bytes(tile_m, tile_k, cin_p, cout_p, out_bytes):
    """Double-buffered tile footprint with headroom, capped below v7x VMEM."""
    bf16 = 2
    footprint = (
        2 * tile_m * tile_k * bf16            # A
        + 2 * tile_k * cin_p * bf16           # X (neighbor)
        + 2 * tile_m * cin_p * bf16           # X (root)
        + 2 * tile_m * LANE * 4               # 1/deg (lane-padded, conservative)
        + 2 * cin_p * cout_p * bf16           # W_l
        + 2 * cin_p * cout_p * bf16           # W_r
        + 2 * 8 * cout_p * 4                  # bias (sublane-padded)
        + 2 * tile_m * cout_p * out_bytes     # output
        + tile_m * cin_p * 4                  # fp32 accumulator scratch
    )
    return int(min(max(3 * footprint, 32 * 1024 * 1024), 48 * 1024 * 1024))


# ----------------------------- layer wrapper ---------------------------------
def sage_conv_pallas(a_pad, x_pad, dinv_pad, w_l, w_r, b, *, apply_relu,
                     out_dtype):
    """One SAGEConv layer as a single tiled pallas_call.

    a_pad    : [Np, Np]        bf16  unnormalized adjacency counts (padded)
    x_pad    : [Np, Cin_p]     bf16  node features (padded)
    dinv_pad : [Np, 1]         f32   1/deg (padded rows -> 0)
    w_l,w_r  : [Cin_p, Cout_p] bf16  neighbor / root weights
    b        : [1, Cout_p]     f32   bias
    """
    n_pad = a_pad.shape[0]
    cin_p = x_pad.shape[1]
    cout_p = w_l.shape[1]
    tile_m, tile_k = _choose_tiles(n_pad)
    grid = (n_pad // tile_m, n_pad // tile_k)
    out_bytes = jnp.dtype(out_dtype).itemsize

    kernel = functools.partial(_sage_layer_kernel, apply_relu=apply_relu)
    return pl.pallas_call(
        kernel,
        out_shape=jax.ShapeDtypeStruct((n_pad, cout_p), out_dtype),
        grid_spec=pltpu.PrefetchScalarGridSpec(
            num_scalar_prefetch=0,
            grid=grid,
            in_specs=[
                pl.BlockSpec((tile_m, tile_k), lambda m, k: (m, k)),   # A
                pl.BlockSpec((tile_k, cin_p), lambda m, k: (k, 0)),    # X (nbr)
                pl.BlockSpec((tile_m, cin_p), lambda m, k: (m, 0)),    # X (root)
                pl.BlockSpec((tile_m, 1), lambda m, k: (m, 0)),        # 1/deg
                pl.BlockSpec((cin_p, cout_p), lambda m, k: (0, 0)),    # W_l
                pl.BlockSpec((cin_p, cout_p), lambda m, k: (0, 0)),    # W_r
                pl.BlockSpec((1, cout_p), lambda m, k: (0, 0)),        # bias
            ],
            out_specs=pl.BlockSpec((tile_m, cout_p), lambda m, k: (m, 0)),
            scratch_shapes=[pltpu.VMEM((tile_m, cin_p), jnp.float32)],
        ),
        compiler_params=pltpu.CompilerParams(
            dimension_semantics=("parallel", "arbitrary"),
            vmem_limit_bytes=_vmem_limit_bytes(tile_m, tile_k, cin_p, cout_p,
                                               out_bytes),
        ),
    )(a_pad, x_pad, x_pad, dinv_pad, w_l, w_r, b)


# ----------------------------- glue (plain JAX) ------------------------------
def prepare_graph(edge_index, num_nodes):
    """Graph-static operands; build once and reuse across forward passes.

    Returns:
      a_pad    : [Np, Np] bf16  unnormalized adjacency counts A[dst, src]
                 (small integers -> exact in bf16)
      dinv_pad : [Np, 1]  f32   1/max(deg, 1) per destination row
    """
    n_pad = _padded_num_nodes(num_nodes)
    src, dst = edge_index[0], edge_index[1]
    counts = jnp.zeros((num_nodes, num_nodes), jnp.float32).at[dst, src].add(1.0)
    deg = jnp.sum(counts, axis=1, keepdims=True)
    inv_deg = 1.0 / jnp.maximum(deg, 1.0)     # clamp keeps isolated nodes at 0
    a_pad = _pad2(counts, n_pad, n_pad).astype(jnp.bfloat16)
    dinv_pad = _pad2(inv_deg, n_pad, 1).astype(jnp.float32)
    return a_pad, dinv_pad


def init_graphsage_params(key, in_channels, hidden_channels, out_channels,
                          num_layers=2):
    """Shapes match PyG SAGEConv (lin_l with bias, lin_r without); W stored [Cin,Cout]."""
    dims = [in_channels] + [hidden_channels] * (num_layers - 1) + [out_channels]
    params = []
    for li in range(num_layers):
        cin, cout = dims[li], dims[li + 1]
        key, k1, k2, k3 = jax.random.split(key, 4)
        scale = 1.0 / jnp.sqrt(jnp.float32(cin))
        w_l = jax.random.uniform(k1, (cin, cout), jnp.float32, -scale, scale)
        w_r = jax.random.uniform(k2, (cin, cout), jnp.float32, -scale, scale)
        b_l = jax.random.uniform(k3, (1, cout), jnp.float32, -scale, scale)
        params.append((w_l, w_r, b_l))
    return params


def graphsage_forward(params, x, a_pad, dinv_pad):
    """GraphSAGE forward (eval mode).  a_pad / dinv_pad come from prepare_graph."""
    n = x.shape[0]
    n_pad = a_pad.shape[0]
    num_layers = len(params)
    out_channels = params[-1][0].shape[1]

    h = x.astype(jnp.float32)
    for li, (w_l, w_r, b_l) in enumerate(params):
        is_last = li == num_layers - 1
        cin, cout = w_l.shape
        cin_p = _round_up(cin, LANE)
        cout_p = _round_up(cout, LANE)

        h_pad = _pad2(h, n_pad, cin_p).astype(jnp.bfloat16)
        wl_p = _pad2(w_l, cin_p, cout_p).astype(jnp.bfloat16)
        wr_p = _pad2(w_r, cin_p, cout_p).astype(jnp.bfloat16)
        b_p = _pad2(b_l, 1, cout_p).astype(jnp.float32)

        out_dtype = jnp.float32 if is_last else jnp.bfloat16
        h = sage_conv_pallas(a_pad, h_pad, dinv_pad, wl_p, wr_p, b_p,
                             apply_relu=not is_last, out_dtype=out_dtype)
        # Dropout(p=0.1) is identity in eval mode.
        # NOTE: padded ROWS of the hidden activation equal relu(bias) (agg=0,
        # x=0); this is benign because padded adjacency columns are zero and
        # padded rows are sliced off below.

    return h[:n, :out_channels]


# ----------------------------- reference check -------------------------------
def graphsage_reference(params, x, edge_index):
    n = x.shape[0]
    src, dst = edge_index[0], edge_index[1]
    counts = jnp.zeros((n, n), jnp.float32).at[dst, src].add(1.0)
    deg = jnp.sum(counts, axis=1, keepdims=True)
    a_norm = counts / jnp.maximum(deg, 1.0)
    h = x
    num_layers = len(params)
    for li, (w_l, w_r, b_l) in enumerate(params):
        out = (a_norm @ h) @ w_l + h @ w_r + b_l
        if li != num_layers - 1:
            out = jnp.maximum(out, 0.0)
        h = out
    return h


if __name__ == "__main__":
    key = jax.random.PRNGKey(0)

    num_nodes = 256
    in_channels = 32
    hidden_channels = 64
    out_channels = 16
    num_edges = 1024

    key, kx, ke_src, ke_dst, kp = jax.random.split(key, 5)
    x = jax.random.normal(kx, (num_nodes, in_channels), jnp.float32)
    src = jax.random.randint(ke_src, (num_edges,), 0, num_nodes, jnp.int32)
    dst = jax.random.randint(ke_dst, (num_edges,), 0, num_nodes, jnp.int32)
    edge_index = jnp.stack([src, dst], axis=0)  # [2, E]

    params = init_graphsage_params(kp, in_channels, hidden_channels,
                                   out_channels, num_layers=2)

    # graph-static operands built once, in the compact dtype
    a_pad, dinv_pad = prepare_graph(edge_index, num_nodes)

    out = graphsage_forward(params, x, a_pad, dinv_pad)
    out = jax.block_until_ready(out)

    ref = graphsage_reference(params, x, edge_index)
    assert out.shape == (num_nodes, out_channels)
    # bf16 MXU inputs / bf16 hidden activations (mean-agg scaling is exact f32)
    max_err = jnp.max(jnp.abs(out - ref))
    assert jnp.allclose(out, ref, atol=3e-2, rtol=3e-2), max_err

    print("KERNEL_OK")
</pallas_src>

<mosaic_0001>
module attributes {stable_mosaic.version = 11 : i64} {
  func.func @_sage_layer_kernel(%arg0: i32, %arg1: i32, %arg2: memref<128x256xbf16, #tpu.memory_space<vmem>>, %arg3: memref<256x128xbf16, #tpu.memory_space<vmem>>, %arg4: memref<128x128xbf16, #tpu.memory_space<vmem>>, %arg5: memref<128x1xf32, #tpu.memory_space<vmem>>, %arg6: memref<128x128xbf16, #tpu.memory_space<vmem>>, %arg7: memref<128x128xbf16, #tpu.memory_space<vmem>>, %arg8: memref<1x128xf32, #tpu.memory_space<vmem>>, %arg9: memref<128x128xbf16, #tpu.memory_space<vmem>>, %arg10: memref<128x128xf32, #tpu.memory_space<vmem>>) attributes {dimension_semantics = [#tpu.dimension_semantics<parallel>, #tpu.dimension_semantics<arbitrary>], iteration_bounds = array<i64: 2, 1>, scalar_prefetch = 0 : i64, scratch_operands = 1 : i64, tpu.core_type = #tpu.core_type<tc>, window_params = [{transform_indices = @transform_0, window_bounds = array<i64: 128, 256>}, {transform_indices = @transform_1, window_bounds = array<i64: 256, 128>}, {transform_indices = @transform_2, window_bounds = array<i64: 128, 128>}, {transform_indices = @transform_3, window_bounds = array<i64: 128, 1>}, {pipeline_mode = #tpu.pipeline_mode<synchronous>, transform_indices = @transform_4, window_bounds = array<i64: 128, 128>}, {pipeline_mode = #tpu.pipeline_mode<synchronous>, transform_indices = @transform_5, window_bounds = array<i64: 128, 128>}, {pipeline_mode = #tpu.pipeline_mode<synchronous>, transform_indices = @transform_6, window_bounds = array<i64: 1, 128>}, {transform_indices = @transform_7, window_bounds = array<i64: 128, 128>}]} {
    %c0_i32 = arith.constant 0 : i32
    %0 = arith.cmpi eq, %arg1, %c0_i32 : i32
    %1 = arith.extui %0 : i1 to i32
    %c0_i32_0 = arith.constant 0 : i32
    %2 = arith.cmpi ne, %1, %c0_i32_0 : i32
    scf.if %2 {
      %cst_10 = arith.constant 0.000000e+00 : f32
      %12 = vector.broadcast %cst_10 : f32 to vector<128x128xf32>
      %c0_11 = arith.constant 0 : index
      %c0_12 = arith.constant 0 : index
      %13 = vector.load %arg10[%c0_11, %c0_12] : memref<128x128xf32, #tpu.memory_space<vmem>>, vector<128x128xf32>
      tpu.vector_store %arg10[%c0_11, %c0_12], %12 {strides = array<i32>} : memref<128x128xf32, #tpu.memory_space<vmem>>, vector<128x128xf32>,
    } else {
    }
    %c0 = arith.constant 0 : index
    %c0_1 = arith.constant 0 : index
    %3 = vector.load %arg10[%c0, %c0_1] : memref<128x128xf32, #tpu.memory_space<vmem>>, vector<128x128xf32>
    %c0_2 = arith.constant 0 : index
    %c0_3 = arith.constant 0 : index
    %4 = vector.load %arg2[%c0_2, %c0_3] : memref<128x256xbf16, #tpu.memory_space<vmem>>, vector<128x256xbf16>
    %c0_4 = arith.constant 0 : index
    %c0_5 = arith.constant 0 : index
    %5 = vector.load %arg3[%c0_4, %c0_5] : memref<256x128xbf16, #tpu.memory_space<vmem>>, vector<256x128xbf16>
    %cst = arith.constant dense<0.000000e+00> : vector<128x128xf32>
    %6 = tpu.matmul %4, %5, %cst {dimension_numbers = #tpu.dot_dimension_numbers<[1], [0], [0], [1], [0, 0, 1, 1], [], []>} : vector<128x256xbf16>, vector<256x128xbf16>, vector<128x128xf32> -> vector<128x128xf32>
    %7 = arith.addf %3, %6 : vector<128x128xf32>
    %c0_6 = arith.constant 0 : index
    %c0_7 = arith.constant 0 : index
    %8 = vector.load %arg10[%c0_6, %c0_7] : memref<128x128xf32, #tpu.memory_space<vmem>>, vector<128x128xf32>
    tpu.vector_store %arg10[%c0_6, %c0_7], %7 {strides = array<i32>} : memref<128x128xf32, #tpu.memory_space<vmem>>, vector<128x128xf32>,
    %c0_i32_8 = arith.constant 0 : i32
    %9 = arith.cmpi eq, %arg1, %c0_i32_8 : i32
    %10 = arith.extui %9 : i1 to i32
    %c0_i32_9 = arith.constant 0 : i32
    %11 = arith.cmpi ne, %10, %c0_i32_9 : i32
    scf.if %11 {
      %c0_10 = arith.constant 0 : index
      %c0_11 = arith.constant 0 : index
      %12 = vector.load %arg10[%c0_10, %c0_11] : memref<128x128xf32, #tpu.memory_space<vmem>>, vector<128x128xf32>
      %c0_12 = arith.constant 0 : index
      %c0_13 = arith.constant 0 : index
      %13 = vector.load %arg5[%c0_12, %c0_13] : memref<128x1xf32, #tpu.memory_space<vmem>>, vector<128x1xf32>
      %14 = vector.broadcast %13 : vector<128x1xf32> to vector<128x128xf32>
      %15 = arith.mulf %12, %14 : vector<128x128xf32>
      %16 = arith.truncf %15 : vector<128x128xf32> to vector<128x128xbf16>
      %c0_14 = arith.constant 0 : index
      %c0_15 = arith.constant 0 : index
      %17 = vector.load %arg6[%c0_14, %c0_15] : memref<128x128xbf16, #tpu.memory_space<vmem>>, vector<128x128xbf16>
      %cst_16 = arith.constant dense<0.000000e+00> : vector<128x128xf32>
      %18 = tpu.matmul %16, %17, %cst_16 {dimension_numbers = #tpu.dot_dimension_numbers<[1], [0], [0], [1], [0, 0, 1, 1], [], []>} : vector<128x128xbf16>, vector<128x128xbf16>, vector<128x128xf32> -> vector<128x128xf32>
      %c0_17 = arith.constant 0 : index
      %c0_18 = arith.constant 0 : index
      %19 = vector.load %arg4[%c0_17, %c0_18] : memref<128x128xbf16, #tpu.memory_space<vmem>>, vector<128x128xbf16>
      %c0_19 = arith.constant 0 : index
      %c0_20 = arith.constant 0 : index
      %20 = vector.load %arg7[%c0_19, %c0_20] : memref<128x128xbf16, #tpu.memory_space<vmem>>, vector<128x128xbf16>
      %cst_21 = arith.constant dense<0.000000e+00> : vector<128x128xf32>
      %21 = tpu.matmul %19, %20, %cst_21 {dimension_numbers = #tpu.dot_dimension_numbers<[1], [0], [0], [1], [0, 0, 1, 1], [], []>} : vector<128x128xbf16>, vector<128x128xbf16>, vector<128x128xf32> -> vector<128x128xf32>
      %22 = arith.addf %18, %21 : vector<128x128xf32>
      %c0_22 = arith.constant 0 : index
      %c0_23 = arith.constant 0 : index
      %23 = vector.load %arg8[%c0_22, %c0_23] : memref<1x128xf32, #tpu.memory_space<vmem>>, vector<1x128xf32>
      %24 = vector.broadcast %23 : vector<1x128xf32> to vector<128x128xf32>
      %25 = arith.addf %22, %24 : vector<128x128xf32>
      %cst_24 = arith.constant 0.000000e+00 : f32
      %26 = vector.broadcast %cst_24 : f32 to vector<128x128xf32>
      %27 = arith.maximumf %25, %26 : vector<128x128xf32>
      %28 = arith.truncf %27 : vector<128x128xf32> to vector<128x128xbf16>
      %c0_25 = arith.constant 0 : index
      %c0_26 = arith.constant 0 : index
      %29 = vector.load %arg9[%c0_25, %c0_26] : memref<128x128xbf16, #tpu.memory_space<vmem>>, vector<128x128xbf16>
      tpu.vector_store %arg9[%c0_25, %c0_26], %28 {strides = array<i32>} : memref<128x128xbf16, #tpu.memory_space<vmem>>, vector<128x128xbf16>,
    } else {
    }
    return
  }
  func.func @transform_0(%arg0: i32, %arg1: i32) -> (i32, i32) {
    %c0_i32 = arith.constant 0 : i32
    return %arg0, %arg1 : i32, i32
  }
  func.func @transform_1(%arg0: i32, %arg1: i32) -> (i32, i32) {
    %c0_i32 = arith.constant 0 : i32
    %c0_i32_0 = arith.constant 0 : i32
    return %arg1, %c0_i32 : i32, i32
  }
  func.func @transform_2(%arg0: i32, %arg1: i32) -> (i32, i32) {
    %c0_i32 = arith.constant 0 : i32
    %c0_i32_0 = arith.constant 0 : i32
    return %arg0, %c0_i32 : i32, i32
  }
  func.func @transform_3(%arg0: i32, %arg1: i32) -> (i32, i32) {
    %c0_i32 = arith.constant 0 : i32
    %c0_i32_0 = arith.constant 0 : i32
    return %arg0, %c0_i32 : i32, i32
  }
  func.func @transform_4(%arg0: i32, %arg1: i32) -> (i32, i32) {
    %c0_i32 = arith.constant 0 : i32
    %c0_i32_0 = arith.constant 0 : i32
    %c0_i32_1 = arith.constant 0 : i32
    return %c0_i32, %c0_i32_0 : i32, i32
  }
  func.func @transform_5(%arg0: i32, %arg1: i32) -> (i32, i32) {
    %c0_i32 = arith.constant 0 : i32
    %c0_i32_0 = arith.constant 0 : i32
    %c0_i32_1 = arith.constant 0 : i32
    return %c0_i32, %c0_i32_0 : i32, i32
  }
  func.func @transform_6(%arg0: i32, %arg1: i32) -> (i32, i32) {
    %c0_i32 = arith.constant 0 : i32
    %c0_i32_0 = arith.constant 0 : i32
    %c0_i32_1 = arith.constant 0 : i32
    return %c0_i32, %c0_i32_0 : i32, i32
  }
  func.func @transform_7(%arg0: i32, %arg1: i32) -> (i32, i32) {
    %c0_i32 = arith.constant 0 : i32
    %c0_i32_0 = arith.constant 0 : i32
    return %arg0, %c0_i32 : i32, i32
  }
}

</mosaic_0001>

<bundles_post_ra>
// kernel: tpu_custom_call.1
= control target key start
LH: loop header
LB: loop body
LE: loop exit
PB: predicated region body
PF: predicated region fallthrough
CT: control target
= control target key end

     0   :  { %s2498_s0 = inlined_call_operand.vmem [shape: bf16[256,256], index: 0, kind: input, shape index: {}]   ;;  %s2499_s1 = inlined_call_operand.hbm [shape: bf16[256,128], index: 1, kind: input, shape index: {}]   ;;  %s2500_s2 = inlined_call_operand.hbm [shape: bf16[256,128], index: 2, kind: input, shape index: {}]   ;;  %s2501_s3 = inlined_call_operand.vmem [shape: f32[256,1], index: 3, kind: input, shape index: {}]   ;;  %s2502_s4 = inlined_call_operand.hbm [shape: bf16[128,128], index: 4, kind: input, shape index: {}]   ;;  %s2503_s5 = inlined_call_operand.hbm [shape: bf16[128,128], index: 5, kind: input, shape index: {}]   ;;  %s2504_s6 = inlined_call_operand.vmem [shape: f32[1,128], index: 6, kind: input, shape index: {}]   ;;  %s2505_s7 = inlined_call_operand.hbm [shape: bf16[256,128], index: 7, kind: output, shape index: {}]  }
   0x1   :  { %2510 = sst [smem:[#allocation19_spill]] %s2499_s1 }
   0x2   :  { %2511 = sst [smem:[#allocation20_spill]] %s2502_s4 }
   0x3   :  { %2512 = sst [smem:[#allocation21_spill]] %s2503_s5 }
   0x4   :  { %12 = vsyncpa [#allocation4], 0 }
   0x5   :  { %13 = vsyncpa [#allocation7], 0 }
   0x6   :  { %15 = vsyncpa [#allocation7 + $0x1], 0 }
   0x7   :  { %16 = vsyncpa [#allocation10], 0 }
   0x8   :  { %17 = vsyncpa [#allocation5], 0 }
   0x9   :  { %19 = vsyncpa [#allocation5 + $0x1], 0  ;;  %s2204_s24 = smov 0   ;;  %s2206_s25 = smov 0  }
   0xa   :  { %s2208_s26 = smov 0   ;;  %s2210_s27 = smov 0  }
   0xb   :  { %s2212_s28 = smov 0   ;;  %s2214_s29 = smov 0  }
   0xc LB: > { %s2235_s30 = sadd.s32 4294967295, %s2154_s29   ;;  %s1483_s8 = sadd.s32 4294967294, %s2154_s29   ;;  %s2154_s29 = sphi %s2214_s29, %s25_s29   ;;  %s2150_s28 = sphi %s2212_s28, %s2532_s28   ;;  %s2146_s27 = sphi %s2210_s27, %s2531_s27   ;;  %s2142_s26 = sphi %s2208_s26, %s2530_s26   ;;  %s2138_s25 = sphi %s2206_s25, %s2529_s25   ;;  %s2134_s24 = sphi %s2204_s24, %s2528_s24  }
   0xd   : > { %p111_p0 = scmp.ne.s32.totalorder %s2138_s25, %s2134_s24  ;;  %p112_p1 = scmp.eq.s32.totalorder %s2235_s30, 0 }
   0xe   : > { %p224_p2 = scmp.eq.s32.totalorder %s2235_s30, 1  ;;  %p230_p3 = scmp.eq.s32.totalorder %s1483_s8, 1 }
   0xf   : > { %p2244_p4 = por %p112_p1, %p111_p0  ;;  %p1484_p5 = scmp.ge.s32.totalorder %s2154_s29, 1 }
  0x10   : > { %p2249_p6 = por %p230_p3, %p111_p0  ;;  %p237_p7 = scmp.lt.s32.totalorder %s2154_s29, 3 }
  0x11   : > { %s2517_s4 = sld [smem:[#allocation20_spill]]  ;;  %s2156_s15 = smov [#allocation8]  }
  0x12   : > { %s2514_s10 = scalar_select %p2249_p6, 1, 0 }
  0x13   : > { %p2254_p8 = pnand %p1484_p5, %p237_p7  ;;  %s267_s16 = sshll.u32 %s2156_s15, 4  ;;  %s268_s16 = int_to_ptr.vmem [resolvable:$true] %s267_s16 }
  0x14   : > { %2515 = sst [smem:[#allocation17_spill]] %s2514_s10  ;;  %p1488_p10 = scmp.ge.s32.totalorder %s2154_s29, 2 }
  0x15   : > { %p1854_p9 = pneg %p2254_p8  ;;  %s2519_s1 = sld [smem:[#allocation19_spill]] }
  0x16   : > { %s2506_s21 = smov 64   ;;  %s2507_s22 = smov 4  }
  0x17   : > { %s265_s14 = sshll.u32 %s2517_s4, 4  ;;  %p2266_p11 = pnand %p1854_p9, %p112_p1  ;;  %s266_s14 = int_to_ptr.hbm [resolvable:$true] %s265_s14 }
  0x18   : > { %s2159_s23 = smov [#allocation3]   ;;  %s2520_s5 = sld [smem:[#allocation21_spill]] }
  0x19   : > { %1860 = dma.hbm_to_vmem [thread:$0]  (!%p2266_p11), %s266_s14, 1024, %s268_s16, [#allocation7], %s2506_s21, %s2506_s21, %s2507_s22  }
  0x1a   : > { %s253_s8 = sshll.u32 %s2159_s23, 4  ;;  %s2160_s14 = smov [#allocation9]   ;;  %s254_s8 = int_to_ptr.vmem [resolvable:$true] %s253_s8 }
  0x1b   : > { %s251_s20 = sshll.u32 %s2519_s1, 4  ;;  %s281_s16 = sshll.u32 %s2160_s14, 4  ;;  %s252_s20 = int_to_ptr.hbm [resolvable:$true] %s251_s20  ;;  %s282_s16 = int_to_ptr.vmem [resolvable:$true] %s281_s16 }
  0x1c   : > { %1857 = dma.hbm_to_vmem [thread:$0]  (!%p2266_p11), %s252_s20, 2048, %s254_s8, [#allocation4], %s2506_s21, %s2506_s21, %s2507_s22  }
  0x1d   : > { %s37_s18 = sadd.s32 1, %s2150_s28  ;;  %p105_p13 = scmp.ne.s32.totalorder %s2142_s26, %s2138_s25 }
  0x1e   : > { %s279_s15 = sshll.u32 %s2520_s5, 4  ;;  %p39_p12 = scmp.ge.s32.totalorder %s37_s18, 2  ;;  %s280_s15 = int_to_ptr.hbm [resolvable:$true] %s279_s15 }
  0x1f   : > { %1863 = dma.hbm_to_vmem [thread:$0]  (!%p2266_p11), %s280_s15, 1024, %s282_s16, [#allocation10], %s2506_s21, %s2506_s21, %s2507_s22  }
  0x20   : > { %p106_p0 = scmp.eq.s32.totalorder %s2154_s29, 0  ;;  %s2534_s18 = smov (%p39_p12, %s37_s18), 0 }
  0x21   : > { %2521 = sst [smem:[#allocation18_spill]] %s2534_s18  ;;  %s98_s19 = sadd.s32 1, %s2142_s26 }
  0x22   : > { %p2300_p3 = por %p224_p2, %p105_p13  ;;  %s95_s23 = ssub.s32 %s2150_s28, %s2534_s18 }
  0x23   : > { %p2306_p5 = por %p106_p0, %p105_p13  ;;  %p96_p7 = scmp.eq.s32.totalorder %s95_s23, 0 }
  0x24   : > { %p1875_p9 = scmp.lt.s32.totalorder %s2154_s29, 2  ;;  %s313_s8 = sand.u32 1, %s2154_s29  }
  0x25   : > { %s315_s12 = sand.u32 1, %s2142_s26   ;;  %s1732_s14 = sshll.u32 %s2150_s28, 6 }
  0x26   : > { %s2314_s13 = scalar_select %p96_p7, %s2142_s26, %s98_s19  }
  0x27   : > { %s1489_s15 = sshll.u32 %s315_s12, 6  ;;  %s322_s22 = scalar_lea.hbm %s2500_s2, %s1732_s14 }
  0x28   : > { %s323_s1 = sshll.u32 %s322_s22, 4  ;;  %s317_s4 = scalar_lea.vmem [#allocation6], %s1489_s15  ;;  %s324_s1 = int_to_ptr.hbm [resolvable:$true] %s323_s1 }
  0x29   : > { %s325_s5 = sshll.u32 %s317_s4, 4  ;;  %p1865_p2 = pnand %p1875_p9, %p2306_p5  ;;  %s326_s5 = int_to_ptr.vmem [resolvable:$true] %s325_s5 }
  0x2a   : > { %s314_s18 = scalar_lea.sflag [#allocation7], %s313_s8  ;;  %s2524_s23 = smov 4  }
  0x2b   : > { %s2525_s10 = smov 64   ;;  %346 = sbr.rel (%p2254_p8) target bundleno = 495 (0x1ef), region = 48 }
  0x2c   : > { %1867 = dma.hbm_to_vmem [thread:$0]  (!%p1865_p2), %s324_s1, 1024, %s326_s5, %s314_s18, %s2525_s10, %s2525_s10, %s2524_s23  }
  0x30   : > { %2113 = dma.done.wait (%p112_p1), [#allocation4], 2048  }
  0x31   : > { %2115 = vsyncadd (%p112_p1), [#allocation4], 4294965248  ;;  %s353_s4 = sand.u32 1, %s2235_s30   ;;  %s355_s21 = sand.u32 1, %s2138_s25  }
  0x32   : > { %s2335_s22 = sshll.u32 %s355_s21, 6  ;;  %s354_s1 = scalar_lea.sflag [#allocation7], %s353_s4 }
  0x33   : > { %s2338_s5 = scalar_lea.vmem [#allocation6], %s2335_s22 }
  0x34   : > { %2117 = dma.done.wait (%p2244_p4), %s354_s1, 1024  }
  0x35   : > { %2119 = vsyncadd (%p2244_p4), %s354_s1, 4294966272 }
  0x36   : > { %2121 = dma.done.wait (%p112_p1), [#allocation7], 1024  }
  0x37   : > { %2123 = vsyncadd (%p112_p1), [#allocation7], 4294966272 }
  0x38   : > { %2125 = dma.done.wait (%p112_p1), [#allocation10], 1024  }
  0x39   : > { %2127 = vsyncadd (%p112_p1), [#allocation10], 4294966272  ;;  %s1498_s10 = sshll.u32 %s2146_s27, 4  ;;  %v2161_v0 = vmov 0   ;;  %v1757_v1 = vld [vmem:[#allocation3 + $0x38] sm:$0xff]  ;;  %v1756_v4 = vld [vmem:[#allocation3 + $0x30] sm:$0xff] }
  0x3a   : > { %1936 = vset.pattern.permute.xlu0 %v2161_v0  ;;  %p416_p8 = scmp.lt.s32.totalorder %s1498_s10, 31  ;;  %1937 = vset.pattern.permute.xlu1 %v2161_v0  ;;  %v1765_v2 = vld [vmem:[#allocation3 + $0x78] sm:$0xff]  ;;  %v1764_v5 = vld [vmem:[#allocation3 + $0x70] sm:$0xff]  ;;  %v1755_v7 = vld [vmem:[#allocation3 + $0x28] sm:$0xff]  ;;  %s2434_s14 = scalar_lea.vmem [#allocation11], %s2335_s22 }
  0x3b   : > { %1938 = vset.pattern.permute.xlu2 %v2161_v0  ;;  %695 = vmatpush.bf16.msra.mxu0 %v1757_v1  ;;  %v1763_v8 = vld [vmem:[#allocation3 + $0x68] sm:$0xff]  ;;  %v1754_v10 = vld [vmem:[#allocation3 + $0x20] sm:$0xff]  ;;  %v1753_v13 = vld [vmem:[#allocation3 + $0x18] sm:$0xff]  ;;  %s1790_s16 = sshll.u32 %s2146_s27, 6  ;;  %s1335_s1 = sshll.u32 %s2434_s14, 4  ;;  %s1336_s1 = int_to_ptr.vmem [resolvable:$true] %s1335_s1 }
  0x3c   : > { %s2536_s10 = smov (!%p416_p8, %s1498_s10), 31  ;;  %744 = vmatpush.bf16.msra.mxu1 %v1765_v2  ;;  %v1762_v11 = vld [vmem:[#allocation3 + $0x60] sm:$0xff]  ;;  %v1761_v14 = vld [vmem:[#allocation3 + $0x58] sm:$0xff]  ;;  %v1752_v16 = vld [vmem:[#allocation3 + $0x10] sm:$0xff]  ;;  %s1334_s22 = scalar_lea.hbm %s2505_s7, %s1790_s16 }
  0x3d   : > { %s1733_s9 = sshll.u32 %s2536_s10, 3  ;;  %v1760_v17 = vld [vmem:[#allocation3 + $0x50] sm:$0xff]  ;;  %v1751_v19 = vld [vmem:[#allocation3 + $0x8] sm:$0xff]  ;;  %v1750_v22 = vld [vmem:[#allocation3] sm:$0xff]  ;;  %s1323_s27 = scalar_lea.sflag [#allocation5], %s355_s21 }
  0x3e   : > { %s2361_s19 = scalar_lea.vmem %s2501_s3, %s1733_s9  ;;  %s2374_s8 = scalar_lea.vmem %s2498_s0, %s1733_s9  ;;  %v1759_v20 = vld [vmem:[#allocation3 + $0x48] sm:$0xff]  ;;  %v1758_v23 = vld [vmem:[#allocation3 + $0x40] sm:$0xff]  ;;  %v1789_v63 = vld [vmem:[#allocation9 + $0x38] sm:$0xff] }
  0x3f   : > { %v844_v3 = vld [vmem:[%s2361_s19] sm:$0xff]  ;;  %v846_v6 = vld [vmem:[%s2361_s19 + $0x10] sm:$0xff]  ;;  %696 = vmatpush.bf16.msra.mxu0 %v1756_v4  ;;  %v845_v9 = vld [vmem:[%s2361_s19 + $0x8] sm:$0xff]  ;;  %1108 = vmatpush.bf16.msra.mxu2 %v1789_v63 }
  0x40   : > { %862 = vperm.xlu0 %1936, %v844_v3   ;;  %745 = vmatpush.bf16.msra.mxu1 %v1764_v5  ;;  %v847_v12 = vld [vmem:[%s2361_s19 + $0x18] sm:$0xff]  ;;  %v850_v15 = vld [vmem:[%s2361_s19 + $0x30] sm:$0xff]  ;;  %v853_v21 = vld [vmem:[%s2361_s19 + $0x48] sm:$0xff] }
  0x41   : > { %872 = vperm.xlu1 %1937, %v846_v6   ;;  %v851_v18 = vld [vmem:[%s2361_s19 + $0x38] sm:$0xff]  ;;  %v1505_v24 = vld [vmem:[%s2374_s8] sm:$0xf]  ;;  %v1735_v25 = vld [vmem:[%s2374_s8 + $0x4] sm:$0xf0] }
  0x42   : > { %v1734_v26 = vld [vmem:[%s2374_s8 + $0x4] sm:$0xf]  ;;  %v1507_v27 = vld [vmem:[%s2374_s8 + $0x8] sm:$0xf0]  ;;  %v854_v28 = vld [vmem:[%s2361_s19 + $0x50] sm:$0xff]  ;;  %v1506_v29 = vor.u32 %v1735_v25, %v1505_v24 }
  0x43   : > { %697 = vmatpush.bf16.msra.mxu0 %v1755_v7  ;;  %v1510_v30 = vor.u32 %v1734_v26, %v1507_v27  ;;  %v856_v31 = vld [vmem:[%s2361_s19 + $0x60] sm:$0xff]  ;;  %v857_v33 = vld [vmem:[%s2361_s19 + $0x68] sm:$0xff]  ;;  %v859_v34 = vld [vmem:[%s2361_s19 + $0x78] sm:$0xff] }
  0x44   : > { %746 = vmatpush.bf16.msra.mxu1 %v1763_v8  ;;  %v848_v32 = vld [vmem:[%s2361_s19 + $0x20] sm:$0xff]  ;;  %v849_v35 = vld [vmem:[%s2361_s19 + $0x28] sm:$0xff]  ;;  %v1513_v36 = vld [vmem:[%s2374_s8 + $0x10] sm:$0xf] }
  0x45   : > { %882 = vperm.xlu2 %1938, %v848_v32   ;;  %v1737_v37 = vld [vmem:[%s2374_s8 + $0x14] sm:$0xf0]  ;;  %v1736_v38 = vld [vmem:[%s2374_s8 + $0x14] sm:$0xf]  ;;  %v1515_v39 = vld [vmem:[%s2374_s8 + $0x18] sm:$0xf0] }
  0x46   : > { %v1514_v40 = vor.u32 %v1737_v37, %v1513_v36  ;;  %v1518_v41 = vor.u32 %v1736_v38, %v1515_v39  ;;  %v852_v42 = vld [vmem:[%s2361_s19 + $0x40] sm:$0xff]  ;;  %v855_v43 = vld [vmem:[%s2361_s19 + $0x58] sm:$0xff]  ;;  %v1739_v45 = vld [vmem:[%s2374_s8 + $0x24] sm:$0xf0] }
  0x47   : > { %698 = vmatpush.bf16.msra.mxu0 %v1754_v10  ;;  %v1521_v44 = vld [vmem:[%s2374_s8 + $0x20] sm:$0xf]  ;;  %v1738_v46 = vld [vmem:[%s2374_s8 + $0x24] sm:$0xf]  ;;  %v1523_v47 = vld [vmem:[%s2374_s8 + $0x28] sm:$0xf0] }
  0x48   : > { %867 = vperm.xlu0 %1936, %v845_v9   ;;  %747 = vmatpush.bf16.msra.mxu1 %v1762_v11  ;;  %v1522_v48 = vor.u32 %v1739_v45, %v1521_v44  ;;  %v1526_v49 = vor.u32 %v1738_v46, %v1523_v47  ;;  %v858_v50 = vld [vmem:[%s2361_s19 + $0x70] sm:$0xff]  ;;  %v1741_v52 = vld [vmem:[%s2374_s8 + $0x34] sm:$0xf0]  ;;  %v1531_v54 = vld [vmem:[%s2374_s8 + $0x38] sm:$0xf0]  ;;  %s2080_s19 = scalar_lea.hbm %s2505_s7, 128 }
  0x49   : > { %877 = vperm.xlu1 %1937, %v847_v12   ;;  %v1529_v51 = vld [vmem:[%s2374_s8 + $0x30] sm:$0xf]  ;;  %v1740_v53 = vld [vmem:[%s2374_s8 + $0x34] sm:$0xf]  ;;  %v1537_v57 = vld [vmem:[%s2374_s8 + $0x40] sm:$0xf] }
  0x4a   : > { %v1530_v55 = vor.u32 %v1741_v52, %v1529_v51  ;;  %v1534_v56 = vor.u32 %v1740_v53, %v1531_v54  ;;  %v1743_v58 = vld [vmem:[%s2374_s8 + $0x44] sm:$0xf0]  ;;  %v1742_v59 = vld [vmem:[%s2374_s8 + $0x44] sm:$0xf]  ;;  %v1539_v60 = vld [vmem:[%s2374_s8 + $0x48] sm:$0xf0] }
  0x4b   : > { %699 = vmatpush.bf16.msra.mxu0 %v1753_v13  ;;  %v1538_v61 = vor.u32 %v1743_v58, %v1537_v57  ;;  %v1542_v62 = vor.u32 %v1742_v59, %v1539_v60  ;;  %v1788_v0 = vld [vmem:[#allocation9 + $0x30] sm:$0xff]  ;;  %v1773_v1 = vld [vmem:[#allocation8 + $0x38] sm:$0xff]  ;;  %v1787_v2 = vld [vmem:[#allocation9 + $0x28] sm:$0xff] }
  0x4c   : > { %748 = vmatpush.bf16.msra.mxu1 %v1761_v14  ;;  %1205 = vmatpush.bf16.msra.mxu3 %v1773_v1  ;;  %v1545_v3 = vld [vmem:[%s2374_s8 + $0x50] sm:$0xf]  ;;  %v1745_v4 = vld [vmem:[%s2374_s8 + $0x54] sm:$0xf0]  ;;  %v1744_v5 = vld [vmem:[%s2374_s8 + $0x54] sm:$0xf] }
  0x4d   : > { %887 = vperm.xlu2 %1938, %v849_v35   ;;  %1109 = vmatpush.bf16.msra.mxu2 %v1788_v0  ;;  %v1547_v6 = vld [vmem:[%s2374_s8 + $0x58] sm:$0xf0]  ;;  %v1546_v7 = vor.u32 %v1745_v4, %v1545_v3  ;;  %v1786_v9 = vld [vmem:[#allocation9 + $0x20] sm:$0xff]  ;;  %v1772_v10 = vld [vmem:[#allocation8 + $0x30] sm:$0xff] }
  0x4e   : > { %v1550_v8 = vor.u32 %v1744_v5, %v1547_v6  ;;  %v1785_v11 = vld [vmem:[#allocation9 + $0x18] sm:$0xff]  ;;  %v1771_v12 = vld [vmem:[#allocation8 + $0x28] sm:$0xff]  ;;  %v1784_v13 = vld [vmem:[#allocation9 + $0x10] sm:$0xff] }
  0x4f   : > { %700 = vmatpush.bf16.msra.mxu0 %v1752_v16  ;;  %v1770_v14 = vld [vmem:[#allocation8 + $0x20] sm:$0xff]  ;;  %v1747_v16 = vld [vmem:[%s2374_s8 + $0x64] sm:$0xf0]  ;;  %v1768_v24 = vld [vmem:[#allocation8 + $0x10] sm:$0xff] }
  0x50   : > { %892 = vperm.xlu0 %1936, %v850_v15   ;;  %749 = vmatpush.bf16.msra.mxu1 %v1760_v17  ;;  %v1553_v15 = vld [vmem:[%s2374_s8 + $0x60] sm:$0xf]  ;;  %v1746_v17 = vld [vmem:[%s2374_s8 + $0x64] sm:$0xf]  ;;  %v1767_v26 = vld [vmem:[#allocation8 + $0x8] sm:$0xff] }
  0x51   : > { %897 = vperm.xlu1 %1937, %v851_v18   ;;  %1110 = vmatpush.bf16.msra.mxu2 %v1787_v2  ;;  %v1555_v18 = vld [vmem:[%s2374_s8 + $0x68] sm:$0xf0]  ;;  %v1774_v25 = vld [vmem:[%s2338_s5] sm:$0xff]  ;;  %v1776_v38 = vld [vmem:[%s2338_s5 + $0x10] sm:$0xff] }
  0x52   : > { %1206 = vmatpush.bf16.msra.mxu3 %v1772_v10  ;;  %v1766_v27 = vld [vmem:[#allocation8] sm:$0xff] }
  0x53   : > { %701 = vmatpush.bf16.msra.mxu0 %v1751_v19  ;;  %v1783_v19 = vld [vmem:[#allocation9 + $0x8] sm:$0xff] }
  0x54   : > { %750 = vmatpush.bf16.msra.mxu1 %v1759_v20  ;;  %v1769_v20 = vld [vmem:[#allocation8 + $0x18] sm:$0xff] }
  0x55   : > { %902 = vperm.xlu2 %1938, %v852_v42   ;;  %1111 = vmatpush.bf16.msra.mxu2 %v1786_v9  ;;  %v1779_v9 = vld [vmem:[%s2338_s5 + $0x28] sm:$0xff] }
  0x56   : > { %1207 = vmatpush.bf16.msra.mxu3 %v1771_v12 }
  0x57   : > { %702 = vmatpush.bf16.msra.mxu0 %v1750_v22  ;;  %v1558_v22 = vor.u32 %v1746_v17, %v1555_v18 }
  0x58   : > { %907 = vperm.xlu0 %1936, %v853_v21   ;;  %751 = vmatpush.bf16.msra.mxu1 %v1758_v23  ;;  %v1554_v21 = vor.u32 %v1747_v16, %v1553_v15  ;;  %v1782_v23 = vld [vmem:[#allocation9] sm:$0xff] }
  0x59   : > { %912 = vperm.xlu1 %1937, %v854_v28   ;;  %1112 = vmatpush.bf16.msra.mxu2 %v1785_v11  ;;  %v1561_v28 = vld [vmem:[%s2374_s8 + $0x70] sm:$0xf] }
  0x5a   : > { %703 = vmatmul.bf16.vlgmr.msra.gmra.mxu0 %v1506_v29  ;;  %1208 = vmatpush.bf16.msra.mxu3 %v1770_v14  ;;  %v1749_v29 = vld [vmem:[%s2374_s8 + $0x74] sm:$0xf0] }
  0x5b   : > { %752 = vmatmul.bf16.vlgmr.msra.gmra.mxu1 %v1510_v30  ;;  %v1748_v30 = vld [vmem:[%s2374_s8 + $0x74] sm:$0xf]  ;;  %v1562_v32 = vor.u32 %v1749_v29, %v1561_v28 }
  0x5d   : > { %917 = vperm.xlu2 %1938, %v855_v43   ;;  %1113 = vmatpush.bf16.msra.mxu2 %v1784_v13 }
  0x5e   : > { %1209 = vmatpush.bf16.msra.mxu3 %v1769_v20 }
  0x60   : > { %922 = vperm.xlu0 %1936, %v856_v31   ;;  %v1563_v31 = vld [vmem:[%s2374_s8 + $0x78] sm:$0xf0] }
  0x61   : > { %927 = vperm.xlu1 %1937, %v857_v33   ;;  %1114 = vmatpush.bf16.msra.mxu2 %v1783_v19  ;;  %v1566_v33 = vor.u32 %v1748_v30, %v1563_v31 }
  0x62   : > { %1210 = vmatpush.bf16.msra.mxu3 %v1768_v24 }
  0x65   : > { %932 = vperm.xlu2 %1938, %v858_v50   ;;  %1115 = vmatpush.bf16.msra.mxu2 %v1782_v23  ;;  %v1777_v50 = vld [vmem:[%s2338_s5 + $0x18] sm:$0xff] }
  0x66   : > { %1211 = vmatpush.bf16.msra.mxu3 %v1767_v26 }
  0x68   : > { %937 = vperm.xlu0 %1936, %v859_v34   ;;  %1116 = vmatmul.bf16.vlgmr.msra.gmra.mxu2 %v1774_v25  ;;  %v1775_v34 = vld [vmem:[%s2338_s5 + $0x8] sm:$0xff] }
  0x6a   : > { %708 = vmatmul.bf16.gmra.mxu0 %v1514_v40  ;;  %1212 = vmatpush.bf16.msra.mxu3 %v1766_v27 }
  0x6b   : > { %757 = vmatmul.bf16.gmra.mxu1 %v1518_v41 }
  0x78   : > { %1121 = vmatmul.bf16.gmra.mxu2 %v1775_v34 }
  0x7a   : > { %713 = vmatmul.bf16.gmra.mxu0 %v1522_v48 }
  0x7b   : > { %762 = vmatmul.bf16.gmra.mxu1 %v1526_v49 }
  0x88   : > { %1126 = vmatmul.bf16.gmra.mxu2 %v1776_v38 }
  0x8a   : > { %718 = vmatmul.bf16.gmra.mxu0 %v1530_v55 }
  0x8b   : > { %767 = vmatmul.bf16.gmra.mxu1 %v1534_v56 }
  0x98   : > { %1131 = vmatmul.bf16.gmra.mxu2 %v1777_v50 }
  0x9a   : > { %723 = vmatmul.bf16.gmra.mxu0 %v1538_v61 }
  0x9b   : > { %772 = vmatmul.bf16.gmra.mxu1 %v1542_v62  ;;  %v1778_v62 = vld [vmem:[%s2338_s5 + $0x20] sm:$0xff] }
  0x9f   : > { %v883_v59 = vpop.permute.xlu2 %882 }
  0xa7   : > { %v888_v3 = vpop.permute.xlu2 %887 }
  0xa8   : > { %1136 = vmatmul.bf16.gmra.mxu2 %v1778_v62 }
  0xaa   : > { %728 = vmatmul.bf16.gmra.mxu0 %v1546_v7 }
  0xab   : > { %777 = vmatmul.bf16.gmra.mxu1 %v1550_v8 }
  0xaf   : > { %v903_v27 = vpop.permute.xlu2 %902 }
  0xb2   : > { %v863_v35 = vpop.permute.xlu0 %862 }
  0xb3   : > { %v873_v47 = vpop.permute.xlu1 %872 }
  0xb8   : > { %1141 = vmatmul.bf16.gmra.mxu2 %v1779_v9 }
  0xba   : > { %733 = vmatmul.bf16.gmra.mxu0 %v1554_v21  ;;  %v868_v43 = vpop.permute.xlu0 %867  ;;  %v1780_v21 = vld [vmem:[%s2338_s5 + $0x30] sm:$0xff] }
  0xbb   : > { %782 = vmatmul.bf16.gmra.mxu1 %v1558_v22  ;;  %v878_v55 = vpop.permute.xlu1 %877 }
  0xc2   : > { %v893_v14 = vpop.permute.xlu0 %892 }
  0xc3   : > { %v898_v15 = vpop.permute.xlu1 %897 }
  0xc8   : > { %1146 = vmatmul.bf16.gmra.mxu2 %v1780_v21 }
  0xca   : > { %738 = vmatmul.bf16.gmra.mxu0 %v1562_v32  ;;  %v908_v26 = vpop.permute.xlu0 %907 }
  0xcb   : > { %787 = vmatmul.bf16.gmra.mxu1 %v1566_v33  ;;  %v1781_v33 = vld [vmem:[%s2338_s5 + $0x38] sm:$0xff]  ;;  %v913_v38 = vpop.permute.xlu1 %912  ;;  %s1337_s5 = sshll.u32 %s1334_s22, 4  ;;  %s1338_s5 = int_to_ptr.hbm [resolvable:$true] %s1337_s5 }
  0xcc   : > { %s2074_s10 = sshra.s32 %s1338_s5, 4  ;;  %s2075_s10 = int_to_ptr.hbm [resolvable:$true] %s2074_s10 }
  0xcd   : > { %s2076_s9 = scalar_lea.hbm %s2075_s10, 64  ;;  %p2081_p12 = scmp.lt.s32.totalorder %s2075_s10, %s2505_s7 }
  0xce   : > { %p2077_p1 = scmp.ne.s32.totalorder %s2075_s10, %s2076_s9  ;;  %p2082_p13 = scmp.lt.s32.totalorder %s2080_s19, %s2076_s9 }
  0xd0   : > { %p2078_p4 = pnand %p2077_p1, %p2300_p3  ;;  %p2083_p0 = por %p2082_p13, %p2081_p12 }
  0xd2   : > { %p2079_p11 = pneg %p2078_p4 }
  0xd3   : > { %v928_v50 = vpop.permute.xlu1 %927 }
  0xd4   : > { %p2084_p5 = pnand %p2083_p0, %p2079_p11 }
  0xd7   : > { %v704_v36 = vpop.f32.mrf.mxu0 }
  0xd8   : > { %v753_v37 = vpop.f32.mrf.mxu1  ;;  %1151 = vmatmul.bf16.gmra.mxu2 %v1781_v33 }
  0xd9   : > { %v754_v39 = vadd.f32 %v753_v37, %v704_v36 }
  0xdb   : > { %v940_v44 = vmul.f32 %v863_v35, %v754_v39  ;;  %v918_v39 = vpop.permute.xlu2 %917 }
  0xdf   : > { %v706_v40 = vpop.f32.mrf.mxu0 }
  0xe0   : > { %v755_v41 = vpop.f32.mrf.mxu1 }
  0xe1   : > { %v756_v42 = vadd.f32 %v755_v41, %v706_v40 }
  0xe3   : > { %v941_v45 = vmul.f32 %v868_v43, %v756_v42  ;;  %v933_v62 = vpop.permute.xlu2 %932 }
  0xe5   : > { %v956_v46 = vpack.c.bf16 %v941_v45, %v940_v44 }
  0xe7   : > { %1213 = vmatmul.bf16.vlgmr.msra.gmra.mxu3 %v956_v46  ;;  %v709_v48 = vpop.f32.mrf.mxu0 }
  0xe8   : > { %v758_v49 = vpop.f32.mrf.mxu1 }
  0xe9   : > { %v759_v51 = vadd.f32 %v758_v49, %v709_v48  ;;  %v923_v49 = vpop.permute.xlu0 %922 }
  0xeb   : > { %v942_v56 = vmul.f32 %v873_v47, %v759_v51 }
  0xef   : > { %v711_v52 = vpop.f32.mrf.mxu0 }
  0xf0   : > { %v760_v53 = vpop.f32.mrf.mxu1 }
  0xf1   : > { %v761_v54 = vadd.f32 %v760_v53, %v711_v52 }
  0xf3   : > { %v943_v57 = vmul.f32 %v878_v55, %v761_v54 }
  0xf5   : > { %v957_v58 = vpack.c.bf16 %v943_v57, %v942_v56  ;;  %v1117_v56 = vpop.f32.mrf.mxu2 }
  0xf7   : > { %1218 = vmatmul.bf16.gmra.mxu3 %v957_v58  ;;  %v714_v60 = vpop.f32.mrf.mxu0 }
  0xf8   : > { %v763_v61 = vpop.f32.mrf.mxu1 }
  0xf9   : > { %v764_v63 = vadd.f32 %v763_v61, %v714_v60  ;;  %v938_v61 = vpop.permute.xlu0 %937 }
  0xfb   : > { %v944_v4 = vmul.f32 %v883_v59, %v764_v63 }
  0xff   : > { %v716_v0 = vpop.f32.mrf.mxu0 }
 0x100   : > { %v765_v1 = vpop.f32.mrf.mxu1 }
 0x101   : > { %v766_v2 = vadd.f32 %v765_v1, %v716_v0 }
 0x103   : > { %v945_v5 = vmul.f32 %v888_v3, %v766_v2  ;;  %v1119_v2 = vpop.f32.mrf.mxu2 }
 0x105   : > { %v958_v6 = vpack.c.bf16 %v945_v5, %v944_v4 }
 0x107   : > { %1223 = vmatmul.bf16.gmra.mxu3 %v958_v6  ;;  %v719_v7 = vpop.f32.mrf.mxu0 }
 0x108   : > { %v768_v8 = vpop.f32.mrf.mxu1 }
 0x109   : > { %v769_v10 = vadd.f32 %v768_v8, %v719_v7  ;;  %v2429_v7 = vld [vmem:[%s2504_s6] ss:$0 sm:$0xff] }
 0x10b   : > { %v946_v16 = vmul.f32 %v893_v14, %v769_v10  ;;  %v1122_v3 = vpop.f32.mrf.mxu2 }
 0x10f   : > { %v721_v11 = vpop.f32.mrf.mxu0 }
 0x110   : > { %v770_v12 = vpop.f32.mrf.mxu1 }
 0x111   : > { %v771_v13 = vadd.f32 %v770_v12, %v721_v11 }
 0x113   : > { %v947_v17 = vmul.f32 %v898_v15, %v771_v13  ;;  %v1124_v5 = vpop.f32.mrf.mxu2 }
 0x115   : > { %v959_v18 = vpack.c.bf16 %v947_v17, %v946_v16 }
 0x117   : > { %1228 = vmatmul.bf16.gmra.mxu3 %v959_v18  ;;  %v724_v19 = vpop.f32.mrf.mxu0 }
 0x118   : > { %v773_v20 = vpop.f32.mrf.mxu1 }
 0x119   : > { %v774_v22 = vadd.f32 %v773_v20, %v724_v19 }
 0x11b   : > { %v948_v28 = vmul.f32 %v903_v27, %v774_v22  ;;  %v1127_v11 = vpop.f32.mrf.mxu2 }
 0x11f   : > { %v726_v23 = vpop.f32.mrf.mxu0 }
 0x120   : > { %v775_v24 = vpop.f32.mrf.mxu1 }
 0x121   : > { %v776_v25 = vadd.f32 %v775_v24, %v726_v23 }
 0x123   : > { %v949_v29 = vmul.f32 %v908_v26, %v776_v25  ;;  %v1129_v17 = vpop.f32.mrf.mxu2 }
 0x125   : > { %v960_v30 = vpack.c.bf16 %v949_v29, %v948_v28 }
 0x127   : > { %1233 = vmatmul.bf16.gmra.mxu3 %v960_v30  ;;  %v729_v31 = vpop.f32.mrf.mxu0 }
 0x128   : > { %v778_v32 = vpop.f32.mrf.mxu1 }
 0x129   : > { %v779_v34 = vadd.f32 %v778_v32, %v729_v31 }
 0x12b   : > { %v950_v40 = vmul.f32 %v913_v38, %v779_v34  ;;  %v1132_v25 = vpop.f32.mrf.mxu2 }
 0x12f   : > { %v731_v35 = vpop.f32.mrf.mxu0 }
 0x130   : > { %v780_v36 = vpop.f32.mrf.mxu1 }
 0x131   : > { %v781_v37 = vadd.f32 %v780_v36, %v731_v35 }
 0x133   : > { %v951_v41 = vmul.f32 %v918_v39, %v781_v37  ;;  %v1134_v30 = vpop.f32.mrf.mxu2 }
 0x135   : > { %v961_v42 = vpack.c.bf16 %v951_v41, %v950_v40 }
 0x137   : > { %1238 = vmatmul.bf16.gmra.mxu3 %v961_v42  ;;  %v734_v43 = vpop.f32.mrf.mxu0 }
 0x138   : > { %v783_v44 = vpop.f32.mrf.mxu1 }
 0x139   : > { %v784_v45 = vadd.f32 %v783_v44, %v734_v43 }
 0x13b   : > { %v952_v51 = vmul.f32 %v923_v49, %v784_v45  ;;  %v1137_v38 = vpop.f32.mrf.mxu2 }
 0x13f   : > { %v736_v46 = vpop.f32.mrf.mxu0 }
 0x140   : > { %v785_v47 = vpop.f32.mrf.mxu1 }
 0x141   : > { %v786_v48 = vadd.f32 %v785_v47, %v736_v46 }
 0x143   : > { %v953_v52 = vmul.f32 %v928_v50, %v786_v48  ;;  %v1139_v44 = vpop.f32.mrf.mxu2 }
 0x145   : > { %v962_v53 = vpack.c.bf16 %v953_v52, %v952_v51 }
 0x147   : > { %1243 = vmatmul.bf16.gmra.mxu3 %v962_v53  ;;  %v739_v54 = vpop.f32.mrf.mxu0 }
 0x148   : > { %v788_v55 = vpop.f32.mrf.mxu1 }
 0x149   : > { %v789_v57 = vadd.f32 %v788_v55, %v739_v54 }
 0x14b   : > { %v954_v63 = vmul.f32 %v933_v62, %v789_v57  ;;  %v1142_v50 = vpop.f32.mrf.mxu2 }
 0x14f   : > { %v741_v58 = vpop.f32.mrf.mxu0 }
 0x150   : > { %v790_v59 = vpop.f32.mrf.mxu1 }
 0x151   : > { %v791_v60 = vadd.f32 %v790_v59, %v741_v58 }
 0x153   : > { %v955_v0 = vmul.f32 %v938_v61, %v791_v60  ;;  %v1144_v58 = vpop.f32.mrf.mxu2 }
 0x155   : > { %v963_v1 = vpack.c.bf16 %v955_v0, %v954_v63 }
 0x157   : > { %1248 = vmatmul.bf16.gmra.mxu3 %v963_v1 }
 0x15b   : > { %v1147_v0 = vpop.f32.mrf.mxu2 }
 0x16a   : > { %v1214_v4 = vpop.f32.mrf.mxu3 }
 0x16b   : > { %v1215_v6 = vadd.f32 %v1214_v4, %v1117_v56 }
 0x16d   : > { %v1258_v9 = vadd.f32 %v2429_v7, %v1215_v6  ;;  %v1149_v6 = vpop.f32.mrf.mxu2 }
 0x16f   : > { %v1274_v13 = vmax.f32 %v1258_v9, 0.0 }
 0x172   : > { %v1216_v8 = vpop.f32.mrf.mxu3 }
 0x173   : > { %v1217_v10 = vadd.f32 %v1216_v8, %v1119_v2 }
 0x175   : > { %v1259_v12 = vadd.f32 %v2429_v7, %v1217_v10 }
 0x177   : > { %v1275_v14 = vmax.f32 %v1259_v12, 0.0 }
 0x179   : > { %v1794_v15 = vpack.c.bf16 %v1275_v14, %v1274_v13 }
 0x17a   : > { %v1219_v16 = vpop.f32.mrf.mxu3 }
 0x17b   : > { %1795 = vst [vmem:[%s2434_s14] sm:$0xff] %v1794_v15   ;;  %v1220_v18 = vadd.f32 %v1219_v16, %v1122_v3  ;;  %v1152_v15 = vpop.f32.mrf.mxu2 }
 0x17d   : > { %v1260_v20 = vadd.f32 %v2429_v7, %v1220_v18 }
 0x17f   : > { %v1276_v23 = vmax.f32 %v1260_v20, 0.0 }
 0x182   : > { %v1221_v19 = vpop.f32.mrf.mxu3 }
 0x183   : > { %v1222_v21 = vadd.f32 %v1221_v19, %v1124_v5  ;;  %v1154_v19 = vpop.f32.mrf.mxu2 }
 0x185   : > { %v1261_v22 = vadd.f32 %v2429_v7, %v1222_v21 }
 0x187   : > { %v1277_v24 = vmax.f32 %v1261_v22, 0.0 }
 0x189   : > { %v1799_v26 = vpack.c.bf16 %v1277_v24, %v1276_v23 }
 0x18a   : > { %v1224_v27 = vpop.f32.mrf.mxu3 }
 0x18b   : > { %1831 = vst [vmem:[%s2434_s14 + $0x8] sm:$0xff] %v1799_v26   ;;  %v1225_v28 = vadd.f32 %v1224_v27, %v1127_v11 }
 0x18d   : > { %v1262_v31 = vadd.f32 %v2429_v7, %v1225_v28 }
 0x18f   : > { %v1278_v34 = vmax.f32 %v1262_v31, 0.0 }
 0x192   : > { %v1226_v29 = vpop.f32.mrf.mxu3 }
 0x193   : > { %v1227_v32 = vadd.f32 %v1226_v29, %v1129_v17 }
 0x195   : > { %v1263_v33 = vadd.f32 %v2429_v7, %v1227_v32 }
 0x197   : > { %v1279_v35 = vmax.f32 %v1263_v33, 0.0 }
 0x199   : > { %v1804_v36 = vpack.c.bf16 %v1279_v35, %v1278_v34 }
 0x19a   : > { %v1229_v37 = vpop.f32.mrf.mxu3 }
 0x19b   : > { %1832 = vst [vmem:[%s2434_s14 + $0x10] sm:$0xff] %v1804_v36   ;;  %v1230_v39 = vadd.f32 %v1229_v37, %v1132_v25 }
 0x19d   : > { %v1264_v41 = vadd.f32 %v2429_v7, %v1230_v39 }
 0x19f   : > { %v1280_v45 = vmax.f32 %v1264_v41, 0.0 }
 0x1a2   : > { %v1231_v40 = vpop.f32.mrf.mxu3 }
 0x1a3   : > { %v1232_v42 = vadd.f32 %v1231_v40, %v1134_v30 }
 0x1a5   : > { %v1265_v43 = vadd.f32 %v2429_v7, %v1232_v42 }
 0x1a7   : > { %v1281_v46 = vmax.f32 %v1265_v43, 0.0 }
 0x1a9   : > { %v1809_v47 = vpack.c.bf16 %v1281_v46, %v1280_v45 }
 0x1aa   : > { %v1234_v48 = vpop.f32.mrf.mxu3 }
 0x1ab   : > { %1833 = vst [vmem:[%s2434_s14 + $0x18] sm:$0xff] %v1809_v47   ;;  %v1235_v49 = vadd.f32 %v1234_v48, %v1137_v38 }
 0x1ad   : > { %v1266_v52 = vadd.f32 %v2429_v7, %v1235_v49 }
 0x1af   : > { %v1282_v55 = vmax.f32 %v1266_v52, 0.0 }
 0x1b2   : > { %v1236_v51 = vpop.f32.mrf.mxu3 }
 0x1b3   : > { %v1237_v53 = vadd.f32 %v1236_v51, %v1139_v44 }
 0x1b5   : > { %v1267_v54 = vadd.f32 %v2429_v7, %v1237_v53 }
 0x1b7   : > { %v1283_v56 = vmax.f32 %v1267_v54, 0.0 }
 0x1b9   : > { %v1814_v57 = vpack.c.bf16 %v1283_v56, %v1282_v55 }
 0x1ba   : > { %v1239_v59 = vpop.f32.mrf.mxu3 }
 0x1bb   : > { %1834 = vst [vmem:[%s2434_s14 + $0x20] sm:$0xff] %v1814_v57   ;;  %v1240_v60 = vadd.f32 %v1239_v59, %v1142_v50 }
 0x1bd   : > { %v1268_v62 = vadd.f32 %v2429_v7, %v1240_v60 }
 0x1bf   : > { %v1284_v2 = vmax.f32 %v1268_v62, 0.0 }
 0x1c2   : > { %v1241_v61 = vpop.f32.mrf.mxu3 }
 0x1c3   : > { %v1242_v63 = vadd.f32 %v1241_v61, %v1144_v58 }
 0x1c5   : > { %v1269_v1 = vadd.f32 %v2429_v7, %v1242_v63 }
 0x1c7   : > { %v1285_v3 = vmax.f32 %v1269_v1, 0.0 }
 0x1c9   : > { %v1819_v4 = vpack.c.bf16 %v1285_v3, %v1284_v2 }
 0x1ca   : > { %v1244_v5 = vpop.f32.mrf.mxu3 }
 0x1cb   : > { %1835 = vst [vmem:[%s2434_s14 + $0x28] sm:$0xff] %v1819_v4   ;;  %v1245_v8 = vadd.f32 %v1244_v5, %v1147_v0 }
 0x1cd   : > { %v1270_v10 = vadd.f32 %v2429_v7, %v1245_v8 }
 0x1cf   : > { %v1286_v13 = vmax.f32 %v1270_v10, 0.0 }
 0x1d2   : > { %v1246_v9 = vpop.f32.mrf.mxu3 }
 0x1d3   : > { %v1247_v11 = vadd.f32 %v1246_v9, %v1149_v6 }
 0x1d5   : > { %v1271_v12 = vadd.f32 %v2429_v7, %v1247_v11 }
 0x1d7   : > { %v1287_v14 = vmax.f32 %v1271_v12, 0.0 }
 0x1d9   : > { %v1824_v16 = vpack.c.bf16 %v1287_v14, %v1286_v13 }
 0x1da   : > { %v1249_v17 = vpop.f32.mrf.mxu3 }
 0x1db   : > { %1836 = vst [vmem:[%s2434_s14 + $0x30] sm:$0xff] %v1824_v16   ;;  %v1250_v18 = vadd.f32 %v1249_v17, %v1152_v15 }
 0x1dd   : > { %v1272_v21 = vadd.f32 %v2429_v7, %v1250_v18 }
 0x1df   : > { %v1288_v24 = vmax.f32 %v1272_v21, 0.0 }
 0x1e2   : > { %v1251_v20 = vpop.f32.mrf.mxu3 }
 0x1e3   : > { %v1252_v22 = vadd.f32 %v1251_v20, %v1154_v19 }
 0x1e5   : > { %v1273_v23 = vadd.f32 %v2429_v7, %v1252_v22 }
 0x1e7   : > { %v1289_v25 = vmax.f32 %v1273_v23, 0.0 }
 0x1e9   : > { %v1829_v26 = vpack.c.bf16 %v1289_v25, %v1288_v24 }
 0x1eb   : > { %1837 = vst [vmem:[%s2434_s14 + $0x38] sm:$0xff] %v1829_v26  }
 0x1ec   : > { %2087 = shalt.err (!%p2084_p5)
}
 0x1ed   : > { %s2162_s21 = smov 64   ;;  %s2163_s8 = smov 4  }
 0x1ee   : > { %1852 = dma.vmem_to_hbm [thread:$0]  (%p2300_p3), %s1336_s1, 1024, %s1338_s5, %s1323_s27, %s2162_s21, %s2162_s21, %s2163_s8  }
 0x1ef PF: > { %s1352_s15 = sand.u32 1, %s2134_s24   ;;  %p1869_p7 = pnand %p1488_p10, %p2249_p6 }
 0x1f0   : > { %s1353_s14 = scalar_lea.sflag [#allocation5], %s1352_s15 }
 0x1f1   : > { %p1870_p9 = pneg %p1869_p7 }
 0x1f3   : > { %2129 = dma.done.wait (%p1870_p9), %s1353_s14, 1024  }
 0x1f4   : > { %2131 = vsyncadd (%p1870_p9), %s1353_s14, 4294966272  ;;  %s25_s29 = sadd.s32 1, %s2154_s29   ;;  %s2527_s20 = sld [smem:[#allocation18_spill]] }
 0x1f5   : > { %p22_p2 = scmp.ge.s32.totalorder %s25_s29, 4   ;;  %s2528_s24 = smov %s2138_s25 }
 0x1f6   : > { %s2529_s25 = smov %s2142_s26  ;;  %s2530_s26 = smov %s2314_s13 }
 0x1f7   : > { %s2531_s27 = smov %s2150_s28  ;;  %24 = sbr.rel (!%p22_p2) target bundleno = 12 (0xc), region = 121 }
 0x1fa   : > { %s2532_s28 = smov %s2527_s20 }
 0x1fc   :  { %1359 = vsyncpa [#allocation4], 1 }
 0x1fd   :  { %1361 = vsyncpa [#allocation4 + $0x1], 1 }
 0x1fe   :  { %1362 = vsyncpa [#allocation7], 1 }
 0x1ff   :  { %1364 = vsyncpa [#allocation7 + $0x1], 1 }
 0x200   :  { %1365 = vsyncpa [#allocation10], 1 }
 0x201   :  { %1366 = vsyncpa [#allocation5], 1 }
 0x202   :  { %1368 = vsyncpa [#allocation5 + $0x1], 1 }

</bundles_post_ra>
